<compile_context>
chip_gen: v5e
topology: v5e:2x2
jax: 0.10.0
libtpu: 0.0.40
codegen_flags: <defaults>
</compile_context>

<pallas_src>
import functools
import math

import jax
import jax.numpy as jnp
from jax.experimental import pallas as pl
from jax.experimental.pallas import tpu as pltpu


_LANES = 128
_CHUNK_ROWS = 512          # inner sub-chunk size (review: 512-1024)
_SINGLE_BLOCK_ROWS = 1024  # batches up to this run as one block == one chunk


def _cdiv(a: int, b: int) -> int:
    return -(-a // b)


def _round_up(a: int, b: int) -> int:
    return _cdiv(a, b) * b


def _vmem_capacity_bytes() -> int:
    try:
        return int(pltpu.get_tpu_info().vmem_capacity_bytes)
    except Exception:
        return 64 * 1024 * 1024   # conservative (v7x-sized) fallback


def _choose_block_rows(batch: int, num_cols: int, logits_itemsize: int) -> int:
    """Rows per grid block, with lane-padded VMEM accounting.

    Per pipelined buffer the VMEM cost per row is:
      * logits  (tb, C)  -> lane-padded to (tb, roundup(C,128)) native dtype
      * targets (tb, 1)  -> lane-padded to (tb, 128) int32
    both double-buffered; plus ~5 f32 temporaries of one chunk.
    """
    vmem_cap = _vmem_capacity_bytes()
    padded_cols = _round_up(num_cols, _LANES)
    per_row = 2 * (padded_cols * logits_itemsize + _LANES * 4)
    temp_bytes = 5 * max(_CHUNK_ROWS, _SINGLE_BLOCK_ROWS) * padded_cols * 4
    budget = min(vmem_cap // 4, 20 * 1024 * 1024) - temp_bytes
    rows = max(_CHUNK_ROWS, budget // per_row)
    # Halve the tile on generations with small VMEM (v7x: 64 MiB physical).
    cap = 4096 if vmem_cap >= 96 * 1024 * 1024 else 2048
    rows = int(min(rows, cap))
    rows = max(_CHUNK_ROWS, (rows // _CHUNK_ROWS) * _CHUNK_ROWS)
    if batch <= rows:
        if batch <= _SINGLE_BLOCK_ROWS:
            return batch                       # one block == one chunk
        return min(rows, _round_up(batch, _CHUNK_ROWS))  # one 512-aligned block
    return rows


def _pick_chunk_rows(block_rows: int) -> int:
    if block_rows <= _SINGLE_BLOCK_ROWS:
        return block_rows
    # block_rows is a multiple of 8, so gcd >= 8 and always divides it.
    return math.gcd(block_rows, _CHUNK_ROWS)


def _background_ce_kernel(logits_ref, targets_ref, out_ref, *,
                          total_rows, block_rows, chunk_rows,
                          blocks_per_split, need_mask):
    # logits_ref:  (TB, C) native dtype
    # targets_ref: (TB, 1) int32
    # out_ref:     (1, 1, 1) float32 (per-split resident accumulator)
    split = pl.program_id(0)
    step = pl.program_id(1)

    @pl.when(step == 0)
    def _init():
        out_ref[...] = jnp.zeros_like(out_ref)

    num_cols = logits_ref.shape[1]
    n_chunks = block_rows // chunk_rows

    # Hoisted loop invariants (JAX does not CSE broadcast_in_dim).
    col = jax.lax.broadcasted_iota(jnp.int32, (chunk_rows, num_cols), 1)
    if need_mask:
        row_local = jax.lax.broadcasted_iota(jnp.int32, (chunk_rows, 1), 0)
        block_base = (split * blocks_per_split + step) * block_rows

    def chunk_sum(r0):
        x = logits_ref[pl.ds(r0, chunk_rows), :].astype(jnp.float32)  # (ck, C)
        t = targets_ref[pl.ds(r0, chunk_rows), :]                     # (ck, 1)
        # Remap background / unknown labels (< 0) to extra class N = C - 1.
        t = jnp.where(t < 0, num_cols - 1, t)
        onehot = col == t                                             # (ck, C)
        # Numerically stable log-sum-exp per row.
        m = jnp.max(x, axis=1, keepdims=True)                         # (ck, 1)
        lse = m + jnp.log(jnp.sum(jnp.exp(x - m), axis=1, keepdims=True))
        tgt = jnp.sum(jnp.where(onehot, x, 0.0), axis=1, keepdims=True)
        per_sample = lse - tgt                                        # (ck, 1)
        if need_mask:
            # Rows past the end of the batch (partial block padding / clamped
            # duplicate block) contribute zero.
            row = row_local + (block_base + r0)
            per_sample = jnp.where(row < total_rows, per_sample, 0.0)
        return jnp.sum(per_sample)                                    # scalar

    if n_chunks == 1:
        partial = chunk_sum(0)
    else:
        partial = jax.lax.fori_loop(
            0, n_chunks,
            lambda j, acc: acc + chunk_sum(
                pl.multiple_of(j * chunk_rows, chunk_rows)),
            jnp.float32(0.0))

    out_ref[...] += partial


def background_class_loss(logits: jax.Array, targets: jax.Array,
                          num_classes: int, *,
                          block_rows: int | None = None,
                          num_splits: int | None = None) -> jax.Array:
    """Cross-entropy with background-class remapping (targets < 0 -> num_classes)."""
    B, C = logits.shape
    assert C == num_classes + 1, "logits must have num_classes + 1 columns"
    if B == 0:
        # PyTorch's mean-reduction cross-entropy returns NaN for an empty batch.
        return jnp.float32(jnp.nan)

    targets_2d = targets.astype(jnp.int32).reshape(B, 1)

    tb = block_rows if block_rows is not None else _choose_block_rows(
        B, C, jnp.dtype(logits.dtype).itemsize)
    assert tb == B or tb % 8 == 0, \
        "block_rows must be a multiple of 8 unless it equals the batch size"
    chunk = _pick_chunk_rows(tb)

    blocks_total = _cdiv(B, tb)
    n_splits = num_splits if num_splits is not None else (
        2 if blocks_total >= 2 else 1)          # feed v7x's second TensorCore
    n_splits = max(1, min(n_splits, blocks_total))
    bps = _cdiv(blocks_total, n_splits)

    padded_rows = n_splits * bps * tb
    need_mask = padded_rows != B

    if n_splits * bps == blocks_total:
        def blk(c, i):                      # no out-of-range grid points
            return c * bps + i
    else:
        def blk(c, i):                      # clamp; duplicate block is masked
            return jnp.minimum(c * bps + i, blocks_total - 1)

    kernel = functools.partial(
        _background_ce_kernel, total_rows=B, block_rows=tb, chunk_rows=chunk,
        blocks_per_split=bps, need_mask=need_mask)

    vmem_cap = _vmem_capacity_bytes()
    out = pl.pallas_call(
        kernel,
        out_shape=jax.ShapeDtypeStruct((n_splits, 1, 1), jnp.float32),
        grid=(n_splits, bps),
        in_specs=[
            pl.BlockSpec((tb, C), lambda c, i: (blk(c, i), 0)),
            pl.BlockSpec((tb, 1), lambda c, i: (blk(c, i), 0)),
        ],
        # Per-split (1,1,1) block with an index_map constant along the
        # reduction axis -> resident accumulator, one tiny writeback per split.
        out_specs=pl.BlockSpec((1, 1, 1), lambda c, i: (c, 0, 0)),
        compiler_params=pltpu.CompilerParams(
            dimension_semantics=("parallel", "arbitrary"),
            vmem_limit_bytes=int(min(vmem_cap // 2, 64 * 1024 * 1024)),
        ),
    )(logits, targets_2d)

    return jnp.sum(out) / jnp.float32(B)


def _reference_loss(logits, targets, num_classes):
    t_ref = jnp.where(targets < 0, num_classes, targets)
    logp = jax.nn.log_softmax(logits.astype(jnp.float32), axis=-1)
    return -jnp.mean(logp[jnp.arange(logits.shape[0]), t_ref])


if __name__ == "__main__":
    key = jax.random.PRNGKey(0)

    # ---- Test 1: small demo shape (single block, single chunk) -----------
    num_classes = 10
    B, C = 8, num_classes + 1
    k_logits, k_targets, key = jax.random.split(key, 3)
    logits = jax.random.normal(k_logits, (B, C), dtype=jnp.float32)
    targets = jax.random.randint(k_targets, (B,), 0, num_classes, dtype=jnp.int32)
    targets = targets.at[1].set(-1)   # unknown -> remapped to class N in-kernel
    targets = targets.at[5].set(-3)

    loss = background_class_loss(logits, targets, num_classes)
    jax.block_until_ready(loss)
    ref = _reference_loss(logits, targets, num_classes)
    assert jnp.allclose(loss, ref, atol=1e-5, rtol=1e-5), (loss, ref)

    # ---- Test 2: bf16, partial last block, 2 splits, clamped dup block ----
    num_classes2 = 20
    B2, C2 = 300, num_classes2 + 1
    k_logits2, k_targets2, k_mask2, key = jax.random.split(key, 4)
    logits2 = jax.random.normal(k_logits2, (B2, C2), dtype=jnp.bfloat16)
    targets2 = jax.random.randint(k_targets2, (B2,), 0, num_classes2,
                                  dtype=jnp.int32)
    unk = jax.random.bernoulli(k_mask2, 0.2, (B2,))
    targets2 = jnp.where(unk, -1, targets2)

    loss2 = background_class_loss(logits2, targets2, num_classes2,
                                  block_rows=64, num_splits=2)
    jax.block_until_ready(loss2)
    ref2 = _reference_loss(logits2, targets2, num_classes2)
    assert jnp.allclose(loss2, ref2, atol=1e-4, rtol=1e-4), (loss2, ref2)

    # ---- Test 3: default path (auto tile, inner chunk loop, 2 splits) -----
    num_classes3 = 12
    B3, C3 = 9000, num_classes3 + 1
    k_logits3, k_targets3, k_mask3 = jax.random.split(key, 3)
    logits3 = jax.random.normal(k_logits3, (B3, C3), dtype=jnp.float32)
    targets3 = jax.random.randint(k_targets3, (B3,), 0, num_classes3,
                                  dtype=jnp.int32)
    unk3 = jax.random.bernoulli(k_mask3, 0.1, (B3,))
    targets3 = jnp.where(unk3, -2, targets3)

    loss3 = background_class_loss(logits3, targets3, num_classes3)
    jax.block_until_ready(loss3)
    ref3 = _reference_loss(logits3, targets3, num_classes3)
    assert jnp.allclose(loss3, ref3, atol=1e-4, rtol=1e-4), (loss3, ref3)

    print("KERNEL_OK")
</pallas_src>

<mosaic_0001>
module attributes {stable_mosaic.version = 11 : i64} {
  func.func @_background_ce_kernel(%arg0: i32, %arg1: i32, %arg2: memref<8x11xf32, #tpu.memory_space<vmem>>, %arg3: memref<8x1xi32, #tpu.memory_space<vmem>>, %arg4: memref<1x1x1xf32, #tpu.memory_space<vmem>>) attributes {dimension_semantics = [#tpu.dimension_semantics<parallel>, #tpu.dimension_semantics<arbitrary>], iteration_bounds = array<i64: 1, 1>, scalar_prefetch = 0 : i64, scratch_operands = 0 : i64, tpu.core_type = #tpu.core_type<tc>, window_params = [{transform_indices = @transform_0, window_bounds = array<i64: 8, 11>}, {transform_indices = @transform_1, window_bounds = array<i64: 8, 1>}, {transform_indices = @transform_2, window_bounds = array<i64: 1, 1, 1>}]} {
    %c0_i32 = arith.constant 0 : i32
    %0 = arith.cmpi eq, %arg1, %c0_i32 : i32
    %1 = arith.extui %0 : i1 to i32
    %c0_i32_0 = arith.constant 0 : i32
    %2 = arith.cmpi ne, %1, %c0_i32_0 : i32
    scf.if %2 {
      %cst_15 = arith.constant 0.000000e+00 : f32
      %34 = vector.broadcast %cst_15 : f32 to vector<1x1x1xf32>
      %c0_16 = arith.constant 0 : index
      %c0_17 = arith.constant 0 : index
      %c0_18 = arith.constant 0 : index
      %35 = vector.load %arg4[%c0_16, %c0_17, %c0_18] : memref<1x1x1xf32, #tpu.memory_space<vmem>>, vector<1x1x1xf32>
      tpu.vector_store %arg4[%c0_16, %c0_17, %c0_18], %34 {strides = array<i32>} : memref<1x1x1xf32, #tpu.memory_space<vmem>>, vector<1x1x1xf32>,
    } else {
    }
    %3 = tpu.iota {dimensions = array<i32: 1>} : vector<8x11xi32>
    %c0 = arith.constant 0 : index
    %c0_1 = arith.constant 0 : index
    %4 = vector.load %arg2[%c0, %c0_1] : memref<8x11xf32, #tpu.memory_space<vmem>>, vector<8x11xf32>
    %c0_2 = arith.constant 0 : index
    %c0_3 = arith.constant 0 : index
    %5 = vector.load %arg3[%c0_2, %c0_3] : memref<8x1xi32, #tpu.memory_space<vmem>>, vector<8x1xi32>
    %c0_i32_4 = arith.constant 0 : i32
    %6 = vector.broadcast %c0_i32_4 : i32 to vector<8x1xi32>
    %7 = arith.cmpi slt, %5, %6 : vector<8x1xi32>
    %c10_i32 = arith.constant 10 : i32
    %8 = vector.broadcast %c10_i32 : i32 to vector<8x1xi32>
    %9 = arith.select %7, %8, %5 : vector<8x1xi1>, vector<8x1xi32>
    %10 = vector.broadcast %9 : vector<8x1xi32> to vector<8x11xi32>
    %11 = arith.cmpi eq, %3, %10 : vector<8x11xi32>
    %cst = arith.constant dense<0xFF800000> : vector<8xf32>
    %12 = vector.multi_reduction <maximumf>, %4, %cst [1] : vector<8x11xf32> to vector<8xf32>
    %13 = vector.shape_cast %12 : vector<8xf32> to vector<8x1xf32>
    %14 = vector.broadcast %13 : vector<8x1xf32> to vector<8x11xf32>
    %15 = arith.subf %4, %14 : vector<8x11xf32>
    %16 = math.exp %15 : vector<8x11xf32>
    %cst_5 = arith.constant dense<0.000000e+00> : vector<8xf32>
    %17 = vector.multi_reduction <add>, %16, %cst_5 [1] : vector<8x11xf32> to vector<8xf32>
    %18 = vector.shape_cast %17 : vector<8xf32> to vector<8x1xf32>
    %19 = math.log %18 : vector<8x1xf32>
    %20 = arith.addf %13, %19 : vector<8x1xf32>
    %cst_6 = arith.constant 0.000000e+00 : f32
    %21 = vector.broadcast %cst_6 : f32 to vector<8x11xf32>
    %22 = arith.select %11, %4, %21 : vector<8x11xi1>, vector<8x11xf32>
    %cst_7 = arith.constant dense<0.000000e+00> : vector<8xf32>
    %23 = vector.multi_reduction <add>, %22, %cst_7 [1] : vector<8x11xf32> to vector<8xf32>
    %24 = vector.shape_cast %23 : vector<8xf32> to vector<8x1xf32>
    %25 = arith.subf %20, %24 : vector<8x1xf32>
    %26 = vector.shape_cast %25 : vector<8x1xf32> to vector<1x8x1xf32>
    %cst_8 = arith.constant dense<0.000000e+00> : vector<1xf32>
    %27 = vector.multi_reduction <add>, %26, %cst_8 [1, 2] : vector<1x8x1xf32> to vector<1xf32>
    %28 = vector.shape_cast %27 : vector<1xf32> to vector<1x1x1xf32>
    %29 = vector.extract %28[0, 0, 0] : f32 from vector<1x1x1xf32>
    %c0_9 = arith.constant 0 : index
    %c0_10 = arith.constant 0 : index
    %c0_11 = arith.constant 0 : index
    %30 = vector.load %arg4[%c0_9, %c0_10, %c0_11] : memref<1x1x1xf32, #tpu.memory_space<vmem>>, vector<1x1x1xf32>
    %31 = vector.broadcast %29 : f32 to vector<1x1x1xf32>
    %32 = arith.addf %30, %31 : vector<1x1x1xf32>
    %c0_12 = arith.constant 0 : index
    %c0_13 = arith.constant 0 : index
    %c0_14 = arith.constant 0 : index
    %33 = vector.load %arg4[%c0_12, %c0_13, %c0_14] : memref<1x1x1xf32, #tpu.memory_space<vmem>>, vector<1x1x1xf32>
    tpu.vector_store %arg4[%c0_12, %c0_13, %c0_14], %32 {strides = array<i32>} : memref<1x1x1xf32, #tpu.memory_space<vmem>>, vector<1x1x1xf32>,
    return
  }
  func.func @transform_0(%arg0: i32, %arg1: i32) -> (i32, i32) {
    %c1_i32 = arith.constant 1 : i32
    %0 = arith.muli %arg0, %c1_i32 : i32
    %1 = arith.addi %0, %arg1 : i32
    %c0_i32 = arith.constant 0 : i32
    %c0_i32_0 = arith.constant 0 : i32
    return %1, %c0_i32 : i32, i32
  }
  func.func @transform_1(%arg0: i32, %arg1: i32) -> (i32, i32) {
    %c1_i32 = arith.constant 1 : i32
    %0 = arith.muli %arg0, %c1_i32 : i32
    %1 = arith.addi %0, %arg1 : i32
    %c0_i32 = arith.constant 0 : i32
    %c0_i32_0 = arith.constant 0 : i32
    return %1, %c0_i32 : i32, i32
  }
  func.func @transform_2(%arg0: i32, %arg1: i32) -> (i32, i32, i32) {
    %c0_i32 = arith.constant 0 : i32
    %c0_i32_0 = arith.constant 0 : i32
    %c0_i32_1 = arith.constant 0 : i32
    return %arg0, %c0_i32, %c0_i32_0 : i32, i32, i32
  }
}

</mosaic_0001>

<bundles_post_ra>
// kernel: tpu_custom_call.1
= control target key start
LH: loop header
LB: loop body
LE: loop exit
PB: predicated region body
PF: predicated region fallthrough
CT: control target
= control target key end

     0   :  { %vm62_vm0 = vcmask 89088   ;;  %s192_s0 = inlined_call_operand.vmem [shape: f32[8,11], index: 0, kind: input, shape index: {}]   ;;  %s193_s1 = inlined_call_operand.vmem [shape: s32[8,1], index: 1, kind: input, shape index: {}]   ;;  %s194_s2 = inlined_call_operand.hbm [shape: f32[1,1,1], index: 2, kind: output, shape index: {}]  }
   0x1   :  { %v54_v0 = vld [vmem:[%s192_s0] sm:$0xff] }
   0x2   :  { %7 = vsyncpa [#allocation3], 0  ;;  %v63_v1 = vsel %vm62_vm0, %v54_v0, -inf  ;;  %v160_v2 = vmov 0   ;;  %v55_v3 = vld [vmem:[%s193_s1] sm:$0xff]  ;;  %v52_v10 = vlaneseq  ;;  %vm80_vm3 = vcmask 7168  }
   0x3   :  { %129 = vset.pattern.permute.xlu0 %v160_v2  ;;  %vm56_vm1 = vcmp.lt.s32.totalorder %v55_v3, 0  ;;  %vm50_vm4 = vcmask 0   ;;  %v161_v22 = vmov 0.0   ;;  %s162_s0 = smov [#allocation2]   ;;  %s103_s15 = sshll.u32 %s194_s2, 4  ;;  %s104_s15 = int_to_ptr.hbm [resolvable:$true] %s103_s15 }
   0x4   :  { %64 = vmax.xlane.f32.xlu0 %v63_v1  ;;  %v57_v4 = vsel %vm56_vm1, 10, %v55_v3  ;;  %v53_v11 = vand.u32 127, %v52_v10  ;;  %51 = vst.msk [vmem:[#allocation2] sm:$0x1] %vm50_vm4, %v161_v22  ;;  %s101_s1 = sshll.u32 %s162_s0, 4  ;;  %s102_s1 = int_to_ptr.vmem [resolvable:$true] %s101_s1 }
   0xb   :  { %v91_v30 = vld [vmem:[#allocation2] sm:$0x1] }
  0x18   :  { %59 = vperm.xlu0 %129, %v57_v4  }
  0x77   :  { %v65_v5 = vpop.xlane.xlu0 %64 }
  0x78   :  { %v66_v6 = vsub.f32 %v54_v0, %v65_v5 }
  0x7a   :  { %v67_v7 = vmul.f32 1.442695, %v66_v6 }
  0x7c   :  { %130 = vpow2.f32 %v67_v7 }
  0x82   :  { %v131_v8 = vpop.eup %130 }
  0x83   :  { %v69_v9 = vsel %vm62_vm0, %v131_v8, 0.0 }
  0x84   :  { %70 = vadd.xlane.f32.xlu1 %v69_v9 }
  0x8a   :  { %v60_v12 = vpop.permute.xlu0 %59 }
  0x8b   :  { %vm61_vm2 = vcmp.eq.s32.totalorder %v53_v11, %v60_v12 }
  0x8c   :  { %v75_v13 = vsel %vm61_vm2, %v54_v0, 0.0 }
  0x8d   :  { %v76_v14 = vsel %vm62_vm0, %v75_v13, 0.0 }
  0x8e   :  { %77 = vadd.xlane.f32.xlu1 %v76_v14 }
  0xf7   :  { %v71_v15 = vpop.xlane.xlu1 %70 }
  0xf8   :  { %132 = vlog2.f32 %v71_v15 }
  0xfe   :  { %v133_v16 = vpop.eup %132 }
  0xff   :  { %v73_v17 = vmul.f32 0.6931472, %v133_v16 }
 0x101   :  { %v74_v18 = vadd.f32 %v73_v17, %v65_v5  ;;  %v78_v19 = vpop.xlane.xlu1 %77 }
 0x103   :  { %v79_v20 = vsub.f32 %v74_v18, %v78_v19 }
 0x105   :  { %v81_v21 = vsel %vm80_vm3, %v79_v20, 0.0 }
 0x106   :  { %82 = vadd.xlane.f32.xlu2 %v81_v21 }
 0x179   :  { %v83_v23 = vpop.xlane.xlu2 %82 }
 0x17a   :  { %v84_v24 = vrot.slane %v83_v23, 4 }
 0x17c   :  { %v85_v25 = vadd.f32 %v84_v24, %v83_v23 }
 0x17e   :  { %v86_v26 = vrot.slane %v85_v25, 2 }
 0x180   :  { %v87_v27 = vadd.f32 %v86_v26, %v85_v25 }
 0x182   :  { %v88_v28 = vrot.slane %v87_v27, 1 }
 0x184   :  { %v89_v29 = vadd.f32 %v88_v28, %v87_v27 }
 0x186   :  { %124 = vpush %v89_v29 }
 0x1b7   :  { %s125_s16 = spop %124 }
 0x1b8   :  { %v92_v31 = vstv %s125_s16 }
 0x1b9   :  { %v93_v32 = vadd.f32 %v92_v31, %v91_v30 }
 0x1bb   :  { %95 = vst.msk [vmem:[#allocation2] sm:$0x1] %vm50_vm4, %v93_v32 }
 0x1bc   :  { %106 = dma.vmem_to_hbm [thread:$0]  %s102_s1, 16, %s104_s15, [#allocation3]  }
 0x1bd   :  { %158 = dma.done.wait [#allocation3], 16  }
 0x1be   :  { %159 = vsyncadd [#allocation3], 4294967280 }
 0x1bf   :  { %111 = vsyncpa [#allocation3], 1 }

</bundles_post_ra>
